<compile_context>
chip_gen: v6e
topology: v6e:2x2x1
jax: 0.10.0
libtpu: 0.0.40
codegen_flags: <defaults>
</compile_context>

<pallas_src>
import functools

import jax
import jax.numpy as jnp
from jax.experimental import pallas as pl
from jax.experimental.pallas import tpu as pltpu

_LANE = 128


def _round_up(x, m):
    return (x + m - 1) // m * m


def _query_tpu():
    """Best-effort chip query; falls back to conservative (v7x-like) values."""
    vmem_cap = 64 * 1024 * 1024   # conservative: v7x has 64 MiB / TC
    num_tc = 1                    # conservative: v5e/v6e have 1 TC
    try:
        info = pltpu.get_tpu_info()
        cap = getattr(info, "vmem_capacity_bytes", None)
        if cap:
            vmem_cap = int(cap)
        for attr in ("num_cores", "tensorcore_count", "num_tensorcores",
                     "core_count"):
            n = getattr(info, attr, None)
            if isinstance(n, int) and n > 0:
                num_tc = n
                break
    except Exception:
        pass
    return vmem_cap, num_tc


_VMEM_CAP, _NUM_TC = _query_tpu()


def _min_sublane(dtype):
    """Minimum second-to-last tile dim for a given dtype (packing rule)."""
    return max(8, 32 // jnp.dtype(dtype).itemsize)


def _pick_divisor_tile(dim, target, unit):
    """Largest tile <= target that divides dim and is a multiple of `unit`.
    Returns dim itself when dim <= target; None if no such divisor exists."""
    if dim <= target:
        return dim
    t = (target // unit) * unit
    while t >= unit:
        if dim % t == 0:
            return t
        t -= unit
    return None


# ---------------------------------------------------------------------------
# Kernels
# ---------------------------------------------------------------------------
def _linear_kernel_1k(x_ref, w_ref, b_ref, o_ref):
    """Single K strip: dot + bias + cast, no accumulator round-trip."""
    x = x_ref[...]
    w = w_ref[...]
    if x.dtype != w.dtype:          # in-kernel cast -> bf16 MXU path, no extra HBM pass
        x = x.astype(w.dtype)
    acc = jnp.dot(x, w, preferred_element_type=jnp.float32)
    o_ref[...] = (acc + b_ref[...]).astype(o_ref.dtype)


def _linear_kernel_nk(x_ref, w_ref, b_ref, o_ref, acc_ref):
    """Tiled K reduction with f32 VMEM accumulator."""
    k = pl.program_id(2)

    @pl.when(k == 0)
    def _():
        acc_ref[...] = jnp.zeros_like(acc_ref)

    x = x_ref[...]
    w = w_ref[...]
    if x.dtype != w.dtype:
        x = x.astype(w.dtype)
    acc_ref[...] += jnp.dot(x, w, preferred_element_type=jnp.float32)

    @pl.when(k == pl.num_programs(2) - 1)
    def _():
        o_ref[...] = (acc_ref[...] + b_ref[...]).astype(o_ref.dtype)


# ---------------------------------------------------------------------------
# Parameter prep (one-time, outside the jitted forward)
# ---------------------------------------------------------------------------
def prepare_params(weight, bias, *, storage_dtype=None):
    """weight: (nclass, in_dim) PyTorch layout.

    Returns:
      w_t: (in_dim, n_pad) transposed weight, class dim zero-padded to a
           multiple of 128 lanes, optionally stored in storage_dtype (bf16).
      b:   (1, n_pad) f32 zero-padded bias row.
      nclass: original class count (to slice the padded output).
    """
    nclass, in_dim = weight.shape
    n_pad = _round_up(nclass, _LANE)
    w_t = jnp.zeros((in_dim, n_pad), weight.dtype).at[:, :nclass].set(weight.T)
    b = jnp.zeros((1, n_pad), jnp.float32).at[0, :nclass].set(
        bias.astype(jnp.float32))
    if storage_dtype is not None:
        w_t = w_t.astype(storage_dtype)
    # TODO(synk): optional fp8 weight storage (v7x) with scale folded into bias.
    return w_t, b, nclass


# ---------------------------------------------------------------------------
# Forward
# ---------------------------------------------------------------------------
@functools.partial(jax.jit, static_argnames=("nclass", "tm", "tk", "tn"))
def classifier_s_forward(x, w_t, b, nclass, *, tm=512, tk=2048, tn=1024):
    """y = x @ weight.T + bias  (PyTorch nn.Linear semantics).

    x:   (B, in_dim)            activations (streamed once, native dtype)
    w_t: (in_dim, n_pad)        prepped weight (see prepare_params)
    b:   (1, n_pad) f32         prepped bias
    returns (B, nclass), dtype of x.
    """
    B, in_dim = x.shape
    in_dim_w, n_pad = w_t.shape
    assert in_dim_w == in_dim, "weight/input in_dim mismatch"
    out_dtype = x.dtype

    xb = jnp.dtype(x.dtype).itemsize
    wb = jnp.dtype(w_t.dtype).itemsize
    ob = jnp.dtype(out_dtype).itemsize

    # --- K tiling: divisor of in_dim (no K padding in the common case). -----
    tk_eff = _pick_divisor_tile(in_dim, tk, _LANE)
    if tk_eff is None:
        # Rare fallback: in_dim > tk with no 128-multiple divisor.
        tk_eff = _round_up(min(tk, in_dim), _LANE)
        k_pad = _round_up(in_dim, tk_eff)
        x = jnp.pad(x, ((0, 0), (0, k_pad - in_dim)))
        w_t = jnp.pad(w_t, ((0, k_pad - in_dim), (0, 0)))
        in_dim_p = k_pad
    else:
        in_dim_p = in_dim
    grid_k = in_dim_p // tk_eff

    # --- N tiling: n_pad is already a multiple of 128. -----------------------
    tn_eff = _pick_divisor_tile(n_pad, tn, _LANE)
    grid_n = n_pad // tn_eff

    # --- M tiling: respect the x dtype's minimum sublane count, pad at most
    #     m_unit-1 rows, and pick tm dividing the (lightly) padded batch. -----
    m_unit = _min_sublane(x.dtype)
    b_pad = _round_up(B, m_unit)
    tm_eff = _pick_divisor_tile(b_pad, tm, m_unit)  # always succeeds
    grid_m = b_pad // tm_eff

    # Megacore split: only when >1 TensorCore exists, the grid is too small to
    # feed them, and x traffic dominates W traffic (otherwise each core would
    # re-stream the full weight for no gain).
    if _NUM_TC >= 2 and grid_m * grid_n < _NUM_TC:
        if B * in_dim * xb > in_dim * n_pad * wb:
            half = max(m_unit, _round_up(tm_eff // 2, m_unit))
            if half < tm_eff and b_pad % half == 0:
                tm_eff = half
                grid_m = b_pad // tm_eff

    if b_pad != B:
        x = jnp.pad(x, ((0, b_pad - B), (0, 0)))

    # --- VMEM budget: double-buffered tiles counted once, clamped to chip. ---
    acc_bytes = tm_eff * tn_eff * 4 if grid_k > 1 else 0
    tile_bytes = (
        2 * tm_eff * tk_eff * xb
        + 2 * tk_eff * tn_eff * wb
        + 2 * tm_eff * tn_eff * ob
        + 2 * tn_eff * 4          # bias tile (double-buffered, tiny)
        + acc_bytes
    )
    vmem_limit = min(
        _VMEM_CAP - 4 * 1024 * 1024,
        max(tile_bytes + 2 * 1024 * 1024, 16 * 1024 * 1024),
    )

    if grid_k == 1:
        grid = (grid_m, grid_n)
        grid_spec = pltpu.PrefetchScalarGridSpec(
            num_scalar_prefetch=0,
            grid=grid,
            in_specs=[
                pl.BlockSpec((tm_eff, tk_eff), lambda i, j: (i, 0)),
                pl.BlockSpec((tk_eff, tn_eff), lambda i, j: (0, j)),
                pl.BlockSpec((1, tn_eff), lambda i, j: (0, j)),
            ],
            out_specs=pl.BlockSpec((tm_eff, tn_eff), lambda i, j: (i, j)),
            scratch_shapes=[],
        )
        kernel = _linear_kernel_1k
        semantics = ("parallel", "parallel")
    else:
        grid = (grid_m, grid_n, grid_k)
        grid_spec = pltpu.PrefetchScalarGridSpec(
            num_scalar_prefetch=0,
            grid=grid,
            in_specs=[
                pl.BlockSpec((tm_eff, tk_eff), lambda i, j, k: (i, k)),
                pl.BlockSpec((tk_eff, tn_eff), lambda i, j, k: (k, j)),
                pl.BlockSpec((1, tn_eff), lambda i, j, k: (0, j)),
            ],
            out_specs=pl.BlockSpec((tm_eff, tn_eff), lambda i, j, k: (i, j)),
            scratch_shapes=[pltpu.VMEM((tm_eff, tn_eff), jnp.float32)],
        )
        kernel = _linear_kernel_nk
        semantics = ("parallel", "parallel", "arbitrary")

    y = pl.pallas_call(
        kernel,
        out_shape=jax.ShapeDtypeStruct((b_pad, n_pad), out_dtype),
        grid_spec=grid_spec,
        compiler_params=pltpu.CompilerParams(
            dimension_semantics=semantics,
            vmem_limit_bytes=int(vmem_limit),
        ),
    )(x, w_t, b)

    # Drop batch padding and the lane padding of the class dimension.
    return y[:B, :nclass]


# ---------------------------------------------------------------------------
# Demo / self-test
# ---------------------------------------------------------------------------
def _init_params(key, in_dim, nclass):
    # Mimics nn.Linear default init: U(-1/sqrt(in_dim), 1/sqrt(in_dim)).
    kw, kb = jax.random.split(key)
    bound = 1.0 / jnp.sqrt(jnp.float32(in_dim))
    weight = jax.random.uniform(kw, (nclass, in_dim), jnp.float32, -bound, bound)
    bias = jax.random.uniform(kb, (nclass,), jnp.float32, -bound, bound)
    return weight, bias


if __name__ == "__main__":
    in_dim, nclass, batch = 512, 21, 16

    key = jax.random.PRNGKey(0)
    kx, kp = jax.random.split(key)
    x = jax.random.normal(kx, (batch, in_dim), jnp.float32)
    weight, bias = _init_params(kp, in_dim, nclass)

    y_ref = x @ weight.T + bias

    # --- f32 path (exact nn.Linear semantics) -------------------------------
    w_t, b2, nc = prepare_params(weight, bias)
    y = classifier_s_forward(x, w_t, b2, nc)
    y = jax.block_until_ready(y)
    assert y.shape == (batch, nclass)
    assert jnp.allclose(y, y_ref, atol=1e-5, rtol=1e-5)

    # --- bf16 weight-storage path (halves W HBM traffic; x cast in-kernel,
    #     f32 accumulate + f32 bias add) -------------------------------------
    w_t16, b16, _ = prepare_params(weight, bias, storage_dtype=jnp.bfloat16)
    y16 = classifier_s_forward(x, w_t16, b16, nc)
    y16 = jax.block_until_ready(y16)
    assert jnp.allclose(y16, y_ref, atol=3e-2, rtol=3e-2)

    print("KERNEL_OK")
</pallas_src>

<mosaic_0001>
module attributes {stable_mosaic.version = 11 : i64} {
  func.func @_linear_kernel_1k(%arg0: i32, %arg1: i32, %arg2: memref<16x512xf32, #tpu.memory_space<vmem>>, %arg3: memref<512x128xf32, #tpu.memory_space<vmem>>, %arg4: memref<1x128xf32, #tpu.memory_space<vmem>>, %arg5: memref<16x128xf32, #tpu.memory_space<vmem>>) attributes {dimension_semantics = [#tpu.dimension_semantics<parallel>, #tpu.dimension_semantics<parallel>], iteration_bounds = array<i64: 1, 1>, scalar_prefetch = 0 : i64, scratch_operands = 0 : i64, tpu.core_type = #tpu.core_type<tc>, window_params = [{transform_indices = @transform_0, window_bounds = array<i64: 16, 512>}, {transform_indices = @transform_1, window_bounds = array<i64: 512, 128>}, {transform_indices = @transform_2, window_bounds = array<i64: 1, 128>}, {transform_indices = @transform_3, window_bounds = array<i64: 16, 128>}]} {
    %c0 = arith.constant 0 : index
    %c0_0 = arith.constant 0 : index
    %0 = vector.load %arg2[%c0, %c0_0] : memref<16x512xf32, #tpu.memory_space<vmem>>, vector<16x512xf32>
    %c0_1 = arith.constant 0 : index
    %c0_2 = arith.constant 0 : index
    %1 = vector.load %arg3[%c0_1, %c0_2] : memref<512x128xf32, #tpu.memory_space<vmem>>, vector<512x128xf32>
    %cst = arith.constant dense<0.000000e+00> : vector<16x128xf32>
    %2 = tpu.matmul %0, %1, %cst {dimension_numbers = #tpu.dot_dimension_numbers<[1], [0], [0], [1], [0, 0, 1, 1], [], []>} : vector<16x512xf32>, vector<512x128xf32>, vector<16x128xf32> -> vector<16x128xf32>
    %c0_3 = arith.constant 0 : index
    %c0_4 = arith.constant 0 : index
    %3 = vector.load %arg4[%c0_3, %c0_4] : memref<1x128xf32, #tpu.memory_space<vmem>>, vector<1x128xf32>
    %4 = vector.broadcast %3 : vector<1x128xf32> to vector<16x128xf32>
    %5 = arith.addf %2, %4 : vector<16x128xf32>
    %c0_5 = arith.constant 0 : index
    %c0_6 = arith.constant 0 : index
    %6 = vector.load %arg5[%c0_5, %c0_6] : memref<16x128xf32, #tpu.memory_space<vmem>>, vector<16x128xf32>
    tpu.vector_store %arg5[%c0_5, %c0_6], %5 {strides = array<i32>} : memref<16x128xf32, #tpu.memory_space<vmem>>, vector<16x128xf32>,
    return
  }
  func.func @transform_0(%arg0: i32, %arg1: i32) -> (i32, i32) {
    %c0_i32 = arith.constant 0 : i32
    %c0_i32_0 = arith.constant 0 : i32
    return %arg0, %c0_i32 : i32, i32
  }
  func.func @transform_1(%arg0: i32, %arg1: i32) -> (i32, i32) {
    %c0_i32 = arith.constant 0 : i32
    %c0_i32_0 = arith.constant 0 : i32
    return %c0_i32, %arg1 : i32, i32
  }
  func.func @transform_2(%arg0: i32, %arg1: i32) -> (i32, i32) {
    %c0_i32 = arith.constant 0 : i32
    %c0_i32_0 = arith.constant 0 : i32
    return %c0_i32, %arg1 : i32, i32
  }
  func.func @transform_3(%arg0: i32, %arg1: i32) -> (i32, i32) {
    %c0_i32 = arith.constant 0 : i32
    return %arg0, %arg1 : i32, i32
  }
}

</mosaic_0001>

<bundles_post_ra>
// kernel: classifier_s_forward.1
= control target key start
LH: loop header
LB: loop body
LE: loop exit
PB: predicated region body
PF: predicated region fallthrough
CT: control target
= control target key end

     0   :  { %8 = vsyncpa [#allocation3], 0  ;;  %s487_s0 = inlined_call_operand.hbm [shape: f32[16,512], index: 0, kind: input, shape index: {}]   ;;  %s488_s1 = inlined_call_operand.hbm [shape: f32[512,128], index: 1, kind: input, shape index: {}]   ;;  %s489_s2 = inlined_call_operand.vmem [shape: f32[1,128], index: 2, kind: input, shape index: {}]   ;;  %s490_s3 = inlined_call_operand.hbm [shape: f32[16,128], index: 3, kind: output, shape index: {}]  }
   0x1   :  { %9 = vsyncpa [#allocation6], 0 }
   0x2   :  { %10 = vsyncpa [#allocation4], 0  ;;  %s442_s12 = smov [#allocation2]  }
   0x3   :  { %s16_s13 = sshll.u32 %s442_s12, 4  ;;  %s17_s13 = int_to_ptr.vmem [resolvable:$true] %s16_s13 }
   0x4   :  { %s384_s14 = scalar_lea.vmem %s17_s13, 1024  ;;  %p389_p1 = scmp.lt.s32.totalorder %s17_s13, %s17_s13 }
   0x5   :  { %p385_p0 = scmp.ne.s32.totalorder %s17_s13, %s384_s14  ;;  %p390_p2 = scmp.lt.s32.totalorder %s384_s14, %s384_s14 }
   0x7   :  { %p391_p3 = por %p390_p2, %p389_p1 }
   0x9   :  { %p392_p4 = pnand %p391_p3, %p385_p0 }
   0xb   :  { %395 = shalt.err (!%p392_p4)
}
   0xc   :  { %s443_s15 = smov 512   ;;  %s444_s16 = smov 32  }
   0xd   :  { %22 = dma.hbm_to_vmem [thread:$0]  %s487_s0, 1024, %s17_s13, [#allocation3], %s443_s15, %s443_s15, %s444_s16  }
   0xe   :  { %s445_s19 = smov [#allocation5]  }
   0xf   :  { %s28_s20 = sshll.u32 %s445_s19, 4  ;;  %s29_s20 = int_to_ptr.vmem [resolvable:$true] %s28_s20 }
  0x10   :  { %s404_s21 = scalar_lea.vmem %s29_s20, 8192  ;;  %p409_p6 = scmp.lt.s32.totalorder %s29_s20, %s29_s20 }
  0x11   :  { %p405_p5 = scmp.ne.s32.totalorder %s29_s20, %s404_s21  ;;  %p410_p7 = scmp.lt.s32.totalorder %s404_s21, %s404_s21 }
  0x13   :  { %p411_p8 = por %p410_p7, %p409_p6 }
  0x15   :  { %p412_p9 = pnand %p411_p8, %p405_p5 }
  0x17   :  { %415 = shalt.err (!%p412_p9)
}
  0x18   :  { %s446_s22 = smov 128   ;;  %s447_s23 = smov 8  }
  0x19   :  { %34 = dma.hbm_to_vmem [thread:$0]  %s488_s1, 8192, %s29_s20, [#allocation6], %s446_s22, %s446_s22, %s447_s23  }
  0x1a   :  { %436 = dma.done.wait [#allocation3], 1024  }
  0x1b   :  { %437 = vsyncadd [#allocation3], 4294966272 }
  0x1c   :  { %438 = dma.done.wait [#allocation6], 8192  }
  0x1d   :  { %439 = vsyncadd [#allocation6], 4294959104  ;;  %v82_v0 = vld [vmem:[#allocation5 + $0xf8] sm:$0xff]  ;;  %v81_v4 = vld [vmem:[#allocation5 + $0xf0] sm:$0xff]  ;;  %s448_s26 = smov [#allocation7]  }
  0x1e   :  { %v114_v1 = vld [vmem:[#allocation5 + $0x1f8] sm:$0xff]  ;;  %293 = vmatprep.subr.mxu0 %v82_v0  ;;  %v113_v5 = vld [vmem:[#allocation5 + $0x1f0] sm:$0xff]  ;;  %v80_v8 = vld [vmem:[#allocation5 + $0xe8] sm:$0xff]  ;;  %s279_s27 = sshll.u32 %s448_s26, 4  ;;  %s280_s27 = int_to_ptr.vmem [resolvable:$true] %s279_s27 }
  0x1f   :  { %v66_v2 = vld [vmem:[#allocation5 + $0x78] sm:$0xff]  ;;  %331 = vmatprep.subr.mxu1 %v114_v1  ;;  %v65_v6 = vld [vmem:[#allocation5 + $0x70] sm:$0xff]  ;;  %v112_v9 = vld [vmem:[#allocation5 + $0x1e8] sm:$0xff]  ;;  %p421_p11 = scmp.lt.s32.totalorder %s280_s27, %s280_s27 }
  0x20   :  { %v98_v3 = vld [vmem:[#allocation5 + $0x178] sm:$0xff]  ;;  %294 = vmatpush3.msra.mxu0 %v66_v2  ;;  %v97_v7 = vld [vmem:[#allocation5 + $0x170] sm:$0xff]  ;;  %v64_v10 = vld [vmem:[#allocation5 + $0x68] sm:$0xff] }
  0x21   :  { %332 = vmatpush3.msra.mxu1 %v98_v3  ;;  %295 = vmatprep.subr.mxu0 %v81_v4  ;;  %v96_v11 = vld [vmem:[#allocation5 + $0x168] sm:$0xff]  ;;  %v79_v12 = vld [vmem:[#allocation5 + $0xe0] sm:$0xff]  ;;  %v78_v16 = vld [vmem:[#allocation5 + $0xd8] sm:$0xff] }
  0x22   :  { %333 = vmatprep.subr.mxu1 %v113_v5  ;;  %296 = vmatpush3.msra.mxu0 %v65_v6  ;;  %v111_v13 = vld [vmem:[#allocation5 + $0x1e0] sm:$0xff]  ;;  %v110_v17 = vld [vmem:[#allocation5 + $0x1d8] sm:$0xff]  ;;  %v77_v20 = vld [vmem:[#allocation5 + $0xd0] sm:$0xff] }
  0x23   :  { %334 = vmatpush3.msra.mxu1 %v97_v7  ;;  %297 = vmatprep.subr.mxu0 %v80_v8  ;;  %v63_v14 = vld [vmem:[#allocation5 + $0x60] sm:$0xff]  ;;  %v62_v18 = vld [vmem:[#allocation5 + $0x58] sm:$0xff]  ;;  %v109_v21 = vld [vmem:[#allocation5 + $0x1d0] sm:$0xff] }
  0x24   :  { %335 = vmatprep.subr.mxu1 %v112_v9  ;;  %v95_v15 = vld [vmem:[#allocation5 + $0x160] sm:$0xff]  ;;  %298 = vmatpush3.msra.mxu0 %v64_v10  ;;  %v94_v19 = vld [vmem:[#allocation5 + $0x158] sm:$0xff]  ;;  %v61_v22 = vld [vmem:[#allocation5 + $0x50] sm:$0xff] }
  0x25   :  { %336 = vmatpush3.msra.mxu1 %v96_v11  ;;  %299 = vmatprep.subr.mxu0 %v79_v12  ;;  %v93_v23 = vld [vmem:[#allocation5 + $0x150] sm:$0xff]  ;;  %v76_v24 = vld [vmem:[#allocation5 + $0xc8] sm:$0xff]  ;;  %v75_v28 = vld [vmem:[#allocation5 + $0xc0] sm:$0xff] }
  0x26   :  { %337 = vmatprep.subr.mxu1 %v111_v13  ;;  %300 = vmatpush3.msra.mxu0 %v63_v14  ;;  %v108_v25 = vld [vmem:[#allocation5 + $0x1c8] sm:$0xff]  ;;  %v107_v29 = vld [vmem:[#allocation5 + $0x1c0] sm:$0xff]  ;;  %v74_v32 = vld [vmem:[#allocation5 + $0xb8] sm:$0xff] }
  0x27   :  { %338 = vmatpush3.msra.mxu1 %v95_v15  ;;  %301 = vmatprep.subr.mxu0 %v78_v16  ;;  %v60_v26 = vld [vmem:[#allocation5 + $0x48] sm:$0xff]  ;;  %v59_v30 = vld [vmem:[#allocation5 + $0x40] sm:$0xff]  ;;  %v106_v33 = vld [vmem:[#allocation5 + $0x1b8] sm:$0xff] }
  0x28   :  { %339 = vmatprep.subr.mxu1 %v110_v17  ;;  %302 = vmatpush3.msra.mxu0 %v62_v18  ;;  %v92_v27 = vld [vmem:[#allocation5 + $0x148] sm:$0xff]  ;;  %v91_v31 = vld [vmem:[#allocation5 + $0x140] sm:$0xff]  ;;  %v58_v34 = vld [vmem:[#allocation5 + $0x38] sm:$0xff] }
  0x29   :  { %340 = vmatpush3.msra.mxu1 %v94_v19  ;;  %303 = vmatprep.subr.mxu0 %v77_v20  ;;  %v90_v35 = vld [vmem:[#allocation5 + $0x138] sm:$0xff]  ;;  %v73_v36 = vld [vmem:[#allocation5 + $0xb0] sm:$0xff]  ;;  %v72_v40 = vld [vmem:[#allocation5 + $0xa8] sm:$0xff] }
  0x2a   :  { %341 = vmatprep.subr.mxu1 %v109_v21  ;;  %304 = vmatpush3.msra.mxu0 %v61_v22  ;;  %v105_v37 = vld [vmem:[#allocation5 + $0x1b0] sm:$0xff]  ;;  %v104_v41 = vld [vmem:[#allocation5 + $0x1a8] sm:$0xff]  ;;  %v71_v44 = vld [vmem:[#allocation5 + $0xa0] sm:$0xff] }
  0x2b   :  { %342 = vmatpush3.msra.mxu1 %v93_v23  ;;  %305 = vmatprep.subr.mxu0 %v76_v24  ;;  %v57_v38 = vld [vmem:[#allocation5 + $0x30] sm:$0xff]  ;;  %v56_v42 = vld [vmem:[#allocation5 + $0x28] sm:$0xff]  ;;  %v103_v45 = vld [vmem:[#allocation5 + $0x1a0] sm:$0xff] }
  0x2c   :  { %343 = vmatprep.subr.mxu1 %v108_v25  ;;  %306 = vmatpush3.msra.mxu0 %v60_v26  ;;  %v89_v39 = vld [vmem:[#allocation5 + $0x130] sm:$0xff]  ;;  %v88_v43 = vld [vmem:[#allocation5 + $0x128] sm:$0xff]  ;;  %v55_v46 = vld [vmem:[#allocation5 + $0x20] sm:$0xff] }
  0x2d   :  { %344 = vmatpush3.msra.mxu1 %v92_v27  ;;  %307 = vmatprep.subr.mxu0 %v75_v28  ;;  %v87_v47 = vld [vmem:[#allocation5 + $0x120] sm:$0xff]  ;;  %v70_v48 = vld [vmem:[#allocation5 + $0x98] sm:$0xff]  ;;  %v69_v52 = vld [vmem:[#allocation5 + $0x90] sm:$0xff] }
  0x2e   :  { %345 = vmatprep.subr.mxu1 %v107_v29  ;;  %308 = vmatpush3.msra.mxu0 %v59_v30  ;;  %v102_v49 = vld [vmem:[#allocation5 + $0x198] sm:$0xff]  ;;  %v101_v53 = vld [vmem:[#allocation5 + $0x190] sm:$0xff]  ;;  %v68_v56 = vld [vmem:[#allocation5 + $0x88] sm:$0xff] }
  0x2f   :  { %346 = vmatpush3.msra.mxu1 %v91_v31  ;;  %309 = vmatprep.subr.mxu0 %v74_v32  ;;  %v54_v50 = vld [vmem:[#allocation5 + $0x18] sm:$0xff]  ;;  %v53_v54 = vld [vmem:[#allocation5 + $0x10] sm:$0xff]  ;;  %v100_v57 = vld [vmem:[#allocation5 + $0x188] sm:$0xff] }
  0x30   :  { %347 = vmatprep.subr.mxu1 %v106_v33  ;;  %310 = vmatpush3.msra.mxu0 %v58_v34  ;;  %v86_v51 = vld [vmem:[#allocation5 + $0x118] sm:$0xff]  ;;  %v85_v55 = vld [vmem:[#allocation5 + $0x110] sm:$0xff]  ;;  %v52_v58 = vld [vmem:[#allocation5 + $0x8] sm:$0xff] }
  0x31   :  { %348 = vmatpush3.msra.mxu1 %v90_v35  ;;  %311 = vmatprep.subr.mxu0 %v73_v36  ;;  %v84_v59 = vld [vmem:[#allocation5 + $0x108] sm:$0xff]  ;;  %v67_v60 = vld [vmem:[#allocation5 + $0x80] sm:$0xff]  ;;  %v46_v1 = vld [vmem:[#allocation2 + $0x18] sm:$0xff] }
  0x32   :  { %349 = vmatprep.subr.mxu1 %v105_v37  ;;  %312 = vmatpush3.msra.mxu0 %v57_v38  ;;  %v99_v61 = vld [vmem:[#allocation5 + $0x180] sm:$0xff]  ;;  %v44_v63 = vld [vmem:[#allocation2 + $0x8] sm:$0xff]  ;;  %v45_v3 = vld [vmem:[#allocation2 + $0x10] sm:$0xff] }
  0x33   :  { %350 = vmatpush3.msra.mxu1 %v89_v39  ;;  %313 = vmatprep.subr.mxu0 %v72_v40  ;;  %v51_v62 = vld [vmem:[#allocation5] sm:$0xff]  ;;  %v48_v4 = vld [vmem:[#allocation2 + $0x28] sm:$0xff]  ;;  %v50_v5 = vld [vmem:[#allocation2 + $0x38] sm:$0xff] }
  0x34   :  { %351 = vmatprep.subr.mxu1 %v104_v41  ;;  %314 = vmatpush3.msra.mxu0 %v56_v42  ;;  %v83_v0 = vld [vmem:[#allocation5 + $0x100] sm:$0xff]  ;;  %v49_v7 = vld [vmem:[#allocation2 + $0x30] sm:$0xff] }
  0x35   :  { %352 = vmatpush3.msra.mxu1 %v88_v43  ;;  %315 = vmatprep.subr.mxu0 %v71_v44  ;;  %v43_v2 = vld [vmem:[#allocation2] sm:$0xff] }
  0x36   :  { %353 = vmatprep.subr.mxu1 %v103_v45  ;;  %316 = vmatpush3.msra.mxu0 %v55_v46  ;;  %v47_v6 = vld [vmem:[#allocation2 + $0x20] sm:$0xff] }
  0x37   :  { %354 = vmatpush3.msra.mxu1 %v87_v47  ;;  %317 = vmatprep.subr.mxu0 %v70_v48  ;;  %v292_v10 = vld [vmem:[%s489_s2] ss:$0 sm:$0xff]  ;;  %s416_s2 = scalar_lea.vmem %s280_s27, 256 }
  0x38   :  { %355 = vmatprep.subr.mxu1 %v102_v49  ;;  %318 = vmatpush3.msra.mxu0 %v54_v50  ;;  %p417_p10 = scmp.ne.s32.totalorder %s280_s27, %s416_s2  ;;  %p422_p12 = scmp.lt.s32.totalorder %s416_s2, %s416_s2 }
  0x39   :  { %356 = vmatpush3.msra.mxu1 %v86_v51  ;;  %319 = vmatprep.subr.mxu0 %v69_v52 }
  0x3a   :  { %357 = vmatprep.subr.mxu1 %v101_v53  ;;  %320 = vmatpush3.msra.mxu0 %v53_v54  ;;  %p423_p13 = por %p422_p12, %p421_p11 }
  0x3b   :  { %358 = vmatpush3.msra.mxu1 %v85_v55  ;;  %321 = vmatprep.subr.mxu0 %v68_v56 }
  0x3c   :  { %359 = vmatprep.subr.mxu1 %v100_v57  ;;  %322 = vmatpush3.msra.mxu0 %v52_v58  ;;  %p424_p0 = pnand %p423_p13, %p417_p10 }
  0x3d   :  { %360 = vmatpush3.msra.mxu1 %v84_v59  ;;  %323 = vmatprep.subr.mxu0 %v67_v60 }
  0x3e   :  { %361 = vmatprep.subr.mxu1 %v99_v61  ;;  %324 = vmatpush3.msra.mxu0 %v51_v62 }
  0x3f   :  { %186 = vmatprep.mubr.f32.mxu0 %v44_v63  ;;  %362 = vmatpush3.msra.mxu1 %v83_v0 }
  0x40   :  { %261 = vmatprep.mubr.f32.mxu1 %v46_v1  ;;  %187 = vmatmul.mubr.f32.vlgmr.msra.gmra.mxu0 %v43_v2 }
  0x41   :  { %262 = vmatmul.mubr.f32.vlgmr.msra.gmra.mxu1 %v45_v3  ;;  %191 = vmatprep.mubr.f32.mxu0 %v48_v4 }
  0x42   :  { %266 = vmatprep.mubr.f32.mxu1 %v50_v5 }
  0x44   :  { %192 = vmatmul.mubr.f32.gmra.mxu0 %v47_v6 }
  0x45   :  { %267 = vmatmul.mubr.f32.gmra.mxu1 %v49_v7 }
 0x100   :  { %v325_v8 = vpop.f32.mrf.mxu0 }
 0x101   :  { %v363_v9 = vpop.f32.mrf.mxu1 }
 0x102   :  { %v326_v11 = vpop.f32.mrf.mxu0 }
 0x103   :  { %v364_v12 = vpop.f32.mrf.mxu1  ;;  %v327_v13 = vadd.f32 %v326_v11, %v325_v8 }
 0x104   :  { %v328_v14 = vpop.f32.mrf.mxu0  ;;  %v365_v17 = vadd.f32 %v364_v12, %v363_v9 }
 0x105   :  { %v366_v15 = vpop.f32.mrf.mxu1  ;;  %v189_v16 = vadd.f32 %v327_v13, %v292_v10 }
 0x106   :  { %v329_v18 = vpop.f32.mrf.mxu0 }
 0x107   :  { %v367_v19 = vpop.f32.mrf.mxu1  ;;  %v264_v20 = vadd.f32 %v365_v17, %v189_v16  ;;  %v330_v21 = vadd.f32 %v329_v18, %v328_v14 }
 0x108   :  { %v368_v23 = vadd.f32 %v367_v19, %v366_v15 }
 0x109   :  { %272 = vst [vmem:[#allocation7] sm:$0xff] %v264_v20  ;;  %v194_v22 = vadd.f32 %v330_v21, %v292_v10 }
 0x10b   :  { %v269_v24 = vadd.f32 %v368_v23, %v194_v22 }
 0x10d   :  { %273 = vst [vmem:[#allocation7 + $0x8] sm:$0xff] %v269_v24 }
 0x10e   :  { %427 = shalt.err (!%p424_p0)
}
 0x10f   :  { %285 = dma.vmem_to_hbm [thread:$0]  %s280_s27, 256, %s490_s3, [#allocation4], %s446_s22, %s446_s22, %s447_s23  }
 0x110   :  { %440 = dma.done.wait [#allocation4], 256  }
 0x111   :  { %441 = vsyncadd [#allocation4], 4294967040 }
 0x112   :  { %289 = vsyncpa [#allocation3], 1 }
 0x113   :  { %290 = vsyncpa [#allocation6], 1 }
 0x114   :  { %291 = vsyncpa [#allocation4], 1 }

</bundles_post_ra>
